<compile_context>
chip_gen: v5e
topology: v5e:2x2
jax: 0.10.0
libtpu: 0.0.40
codegen_flags: <defaults>
</compile_context>

<pallas_src>
import functools

import numpy as np
import jax
import jax.numpy as jnp
from jax import lax
from jax.experimental import pallas as pl
from jax.experimental.pallas import tpu as pltpu  # noqa: F401  (TPU backend)

EPS = 1e-5


def _residual_block_kernel(
    x_ref,      # (R, WC)     input slab (also the residual path)
    s_ref,      # (3, R, R)   per-tap y-shift/zero-halo matrices
    b1_ref,     # (3, WC, WC) conv1 band weights
    g1_ref,     # (1, WC)     BN1 gamma (channel-tiled)
    be1_ref,    # (1, WC)     BN1 beta  (channel-tiled)
    b2_ref,     # (3, WC, WC) conv2 band weights
    g2_ref,     # (1, WC)
    be2_ref,    # (1, WC)
    p_ref,      # (WC, WC)    per-channel fold matrix
    out_ref,    # (R, WC)
    *,
    inv_cnt,    # 1 / (N*H*W)  (static)
):
    x = x_ref[...].astype(jnp.float32)          # read once: conv1 input + residual
    P = p_ref[...]

    def conv3x3(slab, band_ref):
        acc = jnp.zeros(slab.shape, jnp.float32)
        for ky in range(3):                      # static unroll: 3 tap-rows
            shifted = jnp.dot(s_ref[ky], slab,
                              preferred_element_type=jnp.float32)       # (R, WC)
            acc = acc + jnp.dot(shifted, band_ref[ky],
                                preferred_element_type=jnp.float32)     # (R, WC)
        return acc

    def batchnorm(y, g_ref, be_ref):
        # training-mode BN: per-channel batch mean / biased variance.
        # Fold the W column-groups per channel with the P matmul (MXU), then a
        # single scale/shift elementwise pass (VPU); rsqrt goes to the EUP.
        ch_sum = jnp.sum(jnp.dot(y, P, preferred_element_type=jnp.float32),
                         axis=0, keepdims=True)                          # (1, WC)
        ch_sumsq = jnp.sum(jnp.dot(y * y, P, preferred_element_type=jnp.float32),
                           axis=0, keepdims=True)                        # (1, WC)
        mu = ch_sum * inv_cnt
        var = ch_sumsq * inv_cnt - mu * mu
        scale = g_ref[...] * lax.rsqrt(var + EPS)
        shift = be_ref[...] - mu * scale
        return y * scale + shift

    # conv1 -> BN1 -> ReLU
    y1 = jnp.maximum(batchnorm(conv3x3(x, b1_ref), g1_ref, be1_ref), 0.0)
    # conv2 -> BN2
    y2 = batchnorm(conv3x3(y1, b2_ref), g2_ref, be2_ref)
    # residual add + ReLU (lane-dense, unmasked store)
    out_ref[...] = jnp.maximum(y2 + x, 0.0).astype(out_ref.dtype)


def build_kernel_constants(params, N, H, W, C):
    """Repack PyTorch-style parameters into the constant matrices the kernel uses."""
    R, WC = N * H, W * C

    # y-shift selection matrices (image boundaries -> zero rows == zero padding).
    S = np.zeros((3, R, R), np.float32)
    for ky in range(3):
        dy = ky - 1
        for n in range(N):
            for y in range(H):
                ys = y + dy
                if 0 <= ys < H:
                    S[ky, n * H + y, n * H + ys] = 1.0

    # conv weight (KH, KW, Cin, Cout) -> block-tridiagonal band matrix per ky.
    def band(w_hwio):
        w = np.asarray(w_hwio, np.float32)
        B = np.zeros((3, WC, WC), np.float32)
        for ky in range(3):
            for x in range(W):
                for kx in range(3):
                    xs = x + kx - 1                      # input column group
                    if 0 <= xs < W:                      # out-of-range == zero pad
                        B[ky, xs * C:(xs + 1) * C, x * C:(x + 1) * C] = w[ky, kx]
        return B

    idx = np.arange(WC)
    P = (idx[:, None] % C == idx[None, :] % C).astype(np.float32)

    def tile_c(v):
        return np.tile(np.asarray(v, np.float32).reshape(1, C), (1, W))

    # Note: conv biases b1/b2 are intentionally NOT passed — training-mode BN
    # subtracts the batch mean, which cancels a per-channel bias exactly.
    return dict(
        S=jnp.asarray(S),
        B1=jnp.asarray(band(params["w1"])),
        B2=jnp.asarray(band(params["w2"])),
        P=jnp.asarray(P),
        g1=jnp.asarray(tile_c(params["g1"])),
        be1=jnp.asarray(tile_c(params["be1"])),
        g2=jnp.asarray(tile_c(params["g2"])),
        be2=jnp.asarray(tile_c(params["be2"])),
    )


def residual_block(x_nhwc, kc):
    """x_nhwc: (N, H, W, C) float32. stride=1, downsample=None (identity residual)."""
    N, H, W, C = x_nhwc.shape
    R, WC = N * H, W * C
    x_slab = x_nhwc.reshape(R, WC)                 # contiguous reshape: layout plumbing only

    conv_flops = 2 * 3 * (2 * R * R * WC + 2 * R * WC * WC)   # 2 convs x 3 tap-rows
    bn_flops = 2 * (2 * 2 * R * WC * WC)                      # 2 BN stat folds
    bytes_acc = 4 * (x_slab.size + kc["S"].size + kc["B1"].size + kc["B2"].size
                     + kc["P"].size + 4 * WC + R * WC)

    out_slab = pl.pallas_call(
        functools.partial(_residual_block_kernel, inv_cnt=1.0 / (N * H * W)),
        out_shape=jax.ShapeDtypeStruct((R, WC), x_nhwc.dtype),
        cost_estimate=pl.CostEstimate(
            flops=int(conv_flops + bn_flops),
            transcendentals=int(2 * WC),
            bytes_accessed=int(bytes_acc),
        ),
    )(x_slab, kc["S"], kc["B1"], kc["g1"], kc["be1"],
      kc["B2"], kc["g2"], kc["be2"], kc["P"])

    return out_slab.reshape(N, H, W, C)


def _reference(x_nhwc, params):
    """Pure-JAX reference (lax.conv, includes the conv biases of the PyTorch spec)."""
    def conv(x, w, b):
        y = lax.conv_general_dilated(
            x, w, window_strides=(1, 1), padding="SAME",
            dimension_numbers=("NHWC", "HWIO", "NHWC"))
        return y + b.reshape(1, 1, 1, -1)

    def bn(y, g, be):
        mean = jnp.mean(y, axis=(0, 1, 2), keepdims=True)
        var = jnp.mean((y - mean) ** 2, axis=(0, 1, 2), keepdims=True)
        return (y - mean) * lax.rsqrt(var + EPS) * g.reshape(1, 1, 1, -1) \
               + be.reshape(1, 1, 1, -1)

    y = jnp.maximum(bn(conv(x_nhwc, params["w1"], params["b1"]),
                       params["g1"], params["be1"]), 0.0)
    y = bn(conv(y, params["w2"], params["b2"]), params["g2"], params["be2"])
    return jnp.maximum(y + x_nhwc, 0.0)


if __name__ == "__main__":
    # Small shapes: batch=2, channels=8, spatial=16x16 -> W*C = 128 lanes exactly.
    # (in_channels == out_channels, stride=1, downsample=None -> identity residual)
    N, H, W, C = 2, 16, 16, 8

    key = jax.random.PRNGKey(0)
    k_x, k_w1, k_b1, k_w2, k_b2, k_g1, k_g2 = jax.random.split(key, 7)

    # PyTorch-layout conv weights (Cout, Cin, KH, KW) -> HWIO (KH, KW, Cin, Cout)
    w1_oihw = jax.random.normal(k_w1, (C, C, 3, 3), jnp.float32) * 0.1
    w2_oihw = jax.random.normal(k_w2, (C, C, 3, 3), jnp.float32) * 0.1

    params = {
        "w1": jnp.transpose(w1_oihw, (2, 3, 1, 0)),
        "b1": jax.random.normal(k_b1, (C,), jnp.float32) * 0.05,
        "g1": 1.0 + 0.1 * jax.random.normal(k_g1, (C,), jnp.float32),
        "be1": jnp.full((C,), 0.02, jnp.float32),
        "w2": jnp.transpose(w2_oihw, (2, 3, 1, 0)),
        "b2": jax.random.normal(k_b2, (C,), jnp.float32) * 0.05,
        "g2": 1.0 + 0.1 * jax.random.normal(k_g2, (C,), jnp.float32),
        "be2": jnp.full((C,), -0.01, jnp.float32),
    }

    kc = build_kernel_constants(params, N, H, W, C)

    # Input in PyTorch NCHW convention, transposed to NHWC for the kernel.
    x_nchw = jax.random.normal(k_x, (N, C, H, W), jnp.float32)
    x_nhwc = jnp.transpose(x_nchw, (0, 2, 3, 1))

    out = jax.block_until_ready(residual_block(x_nhwc, kc))

    ref = _reference(x_nhwc, params)
    max_err = float(jnp.max(jnp.abs(out - ref)))
    assert jnp.allclose(out, ref, atol=2e-4, rtol=2e-4), max_err

    print("KERNEL_OK")
</pallas_src>

<mosaic_0001>
module attributes {stable_mosaic.version = 11 : i64} {
  func.func @_residual_block_kernel(%arg0: memref<32x128xf32, #tpu.memory_space<vmem>>, %arg1: memref<3x32x32xf32, #tpu.memory_space<vmem>>, %arg2: memref<3x128x128xf32, #tpu.memory_space<vmem>>, %arg3: memref<1x128xf32, #tpu.memory_space<vmem>>, %arg4: memref<1x128xf32, #tpu.memory_space<vmem>>, %arg5: memref<3x128x128xf32, #tpu.memory_space<vmem>>, %arg6: memref<1x128xf32, #tpu.memory_space<vmem>>, %arg7: memref<1x128xf32, #tpu.memory_space<vmem>>, %arg8: memref<128x128xf32, #tpu.memory_space<vmem>>, %arg9: memref<32x128xf32, #tpu.memory_space<vmem>>) attributes {dimension_semantics = [], scalar_prefetch = 0 : i64, scratch_operands = 0 : i64, tpu.core_type = #tpu.core_type<tc>} {
    %c0 = arith.constant 0 : index
    %c0_0 = arith.constant 0 : index
    %0 = vector.load %arg0[%c0, %c0_0] : memref<32x128xf32, #tpu.memory_space<vmem>>, vector<32x128xf32>
    %c0_1 = arith.constant 0 : index
    %c0_2 = arith.constant 0 : index
    %1 = vector.load %arg8[%c0_1, %c0_2] : memref<128x128xf32, #tpu.memory_space<vmem>>, vector<128x128xf32>
    %cst = arith.constant 0.000000e+00 : f32
    %2 = vector.broadcast %cst : f32 to vector<32x128xf32>
    %c0_3 = arith.constant 0 : index
    %c0_4 = arith.constant 0 : index
    %c0_5 = arith.constant 0 : index
    %3 = vector.load %arg1[%c0_3, %c0_4, %c0_5] : memref<3x32x32xf32, #tpu.memory_space<vmem>>, vector<1x32x32xf32>
    %4 = vector.shape_cast %3 : vector<1x32x32xf32> to vector<32x32xf32>
    %cst_6 = arith.constant dense<0.000000e+00> : vector<32x128xf32>
    %5 = tpu.matmul %4, %0, %cst_6 {dimension_numbers = #tpu.dot_dimension_numbers<[1], [0], [0], [1], [0, 0, 1, 1], [], []>} : vector<32x32xf32>, vector<32x128xf32>, vector<32x128xf32> -> vector<32x128xf32>
    %c0_7 = arith.constant 0 : index
    %c0_8 = arith.constant 0 : index
    %c0_9 = arith.constant 0 : index
    %6 = vector.load %arg2[%c0_7, %c0_8, %c0_9] : memref<3x128x128xf32, #tpu.memory_space<vmem>>, vector<1x128x128xf32>
    %7 = vector.shape_cast %6 : vector<1x128x128xf32> to vector<128x128xf32>
    %cst_10 = arith.constant dense<0.000000e+00> : vector<32x128xf32>
    %8 = tpu.matmul %5, %7, %cst_10 {dimension_numbers = #tpu.dot_dimension_numbers<[1], [0], [0], [1], [0, 0, 1, 1], [], []>} : vector<32x128xf32>, vector<128x128xf32>, vector<32x128xf32> -> vector<32x128xf32>
    %9 = arith.addf %2, %8 : vector<32x128xf32>
    %c1 = arith.constant 1 : index
    %c0_11 = arith.constant 0 : index
    %c0_12 = arith.constant 0 : index
    %10 = vector.load %arg1[%c1, %c0_11, %c0_12] : memref<3x32x32xf32, #tpu.memory_space<vmem>>, vector<1x32x32xf32>
    %11 = vector.shape_cast %10 : vector<1x32x32xf32> to vector<32x32xf32>
    %cst_13 = arith.constant dense<0.000000e+00> : vector<32x128xf32>
    %12 = tpu.matmul %11, %0, %cst_13 {dimension_numbers = #tpu.dot_dimension_numbers<[1], [0], [0], [1], [0, 0, 1, 1], [], []>} : vector<32x32xf32>, vector<32x128xf32>, vector<32x128xf32> -> vector<32x128xf32>
    %c1_14 = arith.constant 1 : index
    %c0_15 = arith.constant 0 : index
    %c0_16 = arith.constant 0 : index
    %13 = vector.load %arg2[%c1_14, %c0_15, %c0_16] : memref<3x128x128xf32, #tpu.memory_space<vmem>>, vector<1x128x128xf32>
    %14 = vector.shape_cast %13 : vector<1x128x128xf32> to vector<128x128xf32>
    %cst_17 = arith.constant dense<0.000000e+00> : vector<32x128xf32>
    %15 = tpu.matmul %12, %14, %cst_17 {dimension_numbers = #tpu.dot_dimension_numbers<[1], [0], [0], [1], [0, 0, 1, 1], [], []>} : vector<32x128xf32>, vector<128x128xf32>, vector<32x128xf32> -> vector<32x128xf32>
    %16 = arith.addf %9, %15 : vector<32x128xf32>
    %c2 = arith.constant 2 : index
    %c0_18 = arith.constant 0 : index
    %c0_19 = arith.constant 0 : index
    %17 = vector.load %arg1[%c2, %c0_18, %c0_19] : memref<3x32x32xf32, #tpu.memory_space<vmem>>, vector<1x32x32xf32>
    %18 = vector.shape_cast %17 : vector<1x32x32xf32> to vector<32x32xf32>
    %cst_20 = arith.constant dense<0.000000e+00> : vector<32x128xf32>
    %19 = tpu.matmul %18, %0, %cst_20 {dimension_numbers = #tpu.dot_dimension_numbers<[1], [0], [0], [1], [0, 0, 1, 1], [], []>} : vector<32x32xf32>, vector<32x128xf32>, vector<32x128xf32> -> vector<32x128xf32>
    %c2_21 = arith.constant 2 : index
    %c0_22 = arith.constant 0 : index
    %c0_23 = arith.constant 0 : index
    %20 = vector.load %arg2[%c2_21, %c0_22, %c0_23] : memref<3x128x128xf32, #tpu.memory_space<vmem>>, vector<1x128x128xf32>
    %21 = vector.shape_cast %20 : vector<1x128x128xf32> to vector<128x128xf32>
    %cst_24 = arith.constant dense<0.000000e+00> : vector<32x128xf32>
    %22 = tpu.matmul %19, %21, %cst_24 {dimension_numbers = #tpu.dot_dimension_numbers<[1], [0], [0], [1], [0, 0, 1, 1], [], []>} : vector<32x128xf32>, vector<128x128xf32>, vector<32x128xf32> -> vector<32x128xf32>
    %23 = arith.addf %16, %22 : vector<32x128xf32>
    %cst_25 = arith.constant dense<0.000000e+00> : vector<32x128xf32>
    %24 = tpu.matmul %23, %1, %cst_25 {dimension_numbers = #tpu.dot_dimension_numbers<[1], [0], [0], [1], [0, 0, 1, 1], [], []>} : vector<32x128xf32>, vector<128x128xf32>, vector<32x128xf32> -> vector<32x128xf32>
    %cst_26 = arith.constant dense<0.000000e+00> : vector<128xf32>
    %25 = vector.multi_reduction <add>, %24, %cst_26 [0] : vector<32x128xf32> to vector<128xf32>
    %26 = vector.shape_cast %25 : vector<128xf32> to vector<1x128xf32>
    %27 = arith.mulf %23, %23 : vector<32x128xf32>
    %cst_27 = arith.constant dense<0.000000e+00> : vector<32x128xf32>
    %28 = tpu.matmul %27, %1, %cst_27 {dimension_numbers = #tpu.dot_dimension_numbers<[1], [0], [0], [1], [0, 0, 1, 1], [], []>} : vector<32x128xf32>, vector<128x128xf32>, vector<32x128xf32> -> vector<32x128xf32>
    %cst_28 = arith.constant dense<0.000000e+00> : vector<128xf32>
    %29 = vector.multi_reduction <add>, %28, %cst_28 [0] : vector<32x128xf32> to vector<128xf32>
    %30 = vector.shape_cast %29 : vector<128xf32> to vector<1x128xf32>
    %cst_29 = arith.constant 0.001953125 : f32
    %31 = vector.broadcast %cst_29 : f32 to vector<1x128xf32>
    %32 = arith.mulf %26, %31 : vector<1x128xf32>
    %cst_30 = arith.constant 0.001953125 : f32
    %33 = vector.broadcast %cst_30 : f32 to vector<1x128xf32>
    %34 = arith.mulf %30, %33 : vector<1x128xf32>
    %35 = arith.mulf %32, %32 : vector<1x128xf32>
    %36 = arith.subf %34, %35 : vector<1x128xf32>
    %c0_31 = arith.constant 0 : index
    %c0_32 = arith.constant 0 : index
    %37 = vector.load %arg3[%c0_31, %c0_32] : memref<1x128xf32, #tpu.memory_space<vmem>>, vector<1x128xf32>
    %cst_33 = arith.constant 9.99999974E-6 : f32
    %38 = vector.broadcast %cst_33 : f32 to vector<1x128xf32>
    %39 = arith.addf %36, %38 : vector<1x128xf32>
    %40 = math.rsqrt %39 : vector<1x128xf32>
    %41 = arith.mulf %37, %40 : vector<1x128xf32>
    %c0_34 = arith.constant 0 : index
    %c0_35 = arith.constant 0 : index
    %42 = vector.load %arg4[%c0_34, %c0_35] : memref<1x128xf32, #tpu.memory_space<vmem>>, vector<1x128xf32>
    %43 = arith.mulf %32, %41 : vector<1x128xf32>
    %44 = arith.subf %42, %43 : vector<1x128xf32>
    %45 = vector.broadcast %41 : vector<1x128xf32> to vector<32x128xf32>
    %46 = arith.mulf %23, %45 : vector<32x128xf32>
    %47 = vector.broadcast %44 : vector<1x128xf32> to vector<32x128xf32>
    %48 = arith.addf %46, %47 : vector<32x128xf32>
    %cst_36 = arith.constant 0.000000e+00 : f32
    %49 = vector.broadcast %cst_36 : f32 to vector<32x128xf32>
    %50 = arith.maximumf %48, %49 : vector<32x128xf32>
    %cst_37 = arith.constant 0.000000e+00 : f32
    %51 = vector.broadcast %cst_37 : f32 to vector<32x128xf32>
    %c0_38 = arith.constant 0 : index
    %c0_39 = arith.constant 0 : index
    %c0_40 = arith.constant 0 : index
    %52 = vector.load %arg1[%c0_38, %c0_39, %c0_40] : memref<3x32x32xf32, #tpu.memory_space<vmem>>, vector<1x32x32xf32>
    %53 = vector.shape_cast %52 : vector<1x32x32xf32> to vector<32x32xf32>
    %cst_41 = arith.constant dense<0.000000e+00> : vector<32x128xf32>
    %54 = tpu.matmul %53, %50, %cst_41 {dimension_numbers = #tpu.dot_dimension_numbers<[1], [0], [0], [1], [0, 0, 1, 1], [], []>} : vector<32x32xf32>, vector<32x128xf32>, vector<32x128xf32> -> vector<32x128xf32>
    %c0_42 = arith.constant 0 : index
    %c0_43 = arith.constant 0 : index
    %c0_44 = arith.constant 0 : index
    %55 = vector.load %arg5[%c0_42, %c0_43, %c0_44] : memref<3x128x128xf32, #tpu.memory_space<vmem>>, vector<1x128x128xf32>
    %56 = vector.shape_cast %55 : vector<1x128x128xf32> to vector<128x128xf32>
    %cst_45 = arith.constant dense<0.000000e+00> : vector<32x128xf32>
    %57 = tpu.matmul %54, %56, %cst_45 {dimension_numbers = #tpu.dot_dimension_numbers<[1], [0], [0], [1], [0, 0, 1, 1], [], []>} : vector<32x128xf32>, vector<128x128xf32>, vector<32x128xf32> -> vector<32x128xf32>
    %58 = arith.addf %51, %57 : vector<32x128xf32>
    %c1_46 = arith.constant 1 : index
    %c0_47 = arith.constant 0 : index
    %c0_48 = arith.constant 0 : index
    %59 = vector.load %arg1[%c1_46, %c0_47, %c0_48] : memref<3x32x32xf32, #tpu.memory_space<vmem>>, vector<1x32x32xf32>
    %60 = vector.shape_cast %59 : vector<1x32x32xf32> to vector<32x32xf32>
    %cst_49 = arith.constant dense<0.000000e+00> : vector<32x128xf32>
    %61 = tpu.matmul %60, %50, %cst_49 {dimension_numbers = #tpu.dot_dimension_numbers<[1], [0], [0], [1], [0, 0, 1, 1], [], []>} : vector<32x32xf32>, vector<32x128xf32>, vector<32x128xf32> -> vector<32x128xf32>
    %c1_50 = arith.constant 1 : index
    %c0_51 = arith.constant 0 : index
    %c0_52 = arith.constant 0 : index
    %62 = vector.load %arg5[%c1_50, %c0_51, %c0_52] : memref<3x128x128xf32, #tpu.memory_space<vmem>>, vector<1x128x128xf32>
    %63 = vector.shape_cast %62 : vector<1x128x128xf32> to vector<128x128xf32>
    %cst_53 = arith.constant dense<0.000000e+00> : vector<32x128xf32>
    %64 = tpu.matmul %61, %63, %cst_53 {dimension_numbers = #tpu.dot_dimension_numbers<[1], [0], [0], [1], [0, 0, 1, 1], [], []>} : vector<32x128xf32>, vector<128x128xf32>, vector<32x128xf32> -> vector<32x128xf32>
    %65 = arith.addf %58, %64 : vector<32x128xf32>
    %c2_54 = arith.constant 2 : index
    %c0_55 = arith.constant 0 : index
    %c0_56 = arith.constant 0 : index
    %66 = vector.load %arg1[%c2_54, %c0_55, %c0_56] : memref<3x32x32xf32, #tpu.memory_space<vmem>>, vector<1x32x32xf32>
    %67 = vector.shape_cast %66 : vector<1x32x32xf32> to vector<32x32xf32>
    %cst_57 = arith.constant dense<0.000000e+00> : vector<32x128xf32>
    %68 = tpu.matmul %67, %50, %cst_57 {dimension_numbers = #tpu.dot_dimension_numbers<[1], [0], [0], [1], [0, 0, 1, 1], [], []>} : vector<32x32xf32>, vector<32x128xf32>, vector<32x128xf32> -> vector<32x128xf32>
    %c2_58 = arith.constant 2 : index
    %c0_59 = arith.constant 0 : index
    %c0_60 = arith.constant 0 : index
    %69 = vector.load %arg5[%c2_58, %c0_59, %c0_60] : memref<3x128x128xf32, #tpu.memory_space<vmem>>, vector<1x128x128xf32>
    %70 = vector.shape_cast %69 : vector<1x128x128xf32> to vector<128x128xf32>
    %cst_61 = arith.constant dense<0.000000e+00> : vector<32x128xf32>
    %71 = tpu.matmul %68, %70, %cst_61 {dimension_numbers = #tpu.dot_dimension_numbers<[1], [0], [0], [1], [0, 0, 1, 1], [], []>} : vector<32x128xf32>, vector<128x128xf32>, vector<32x128xf32> -> vector<32x128xf32>
    %72 = arith.addf %65, %71 : vector<32x128xf32>
    %cst_62 = arith.constant dense<0.000000e+00> : vector<32x128xf32>
    %73 = tpu.matmul %72, %1, %cst_62 {dimension_numbers = #tpu.dot_dimension_numbers<[1], [0], [0], [1], [0, 0, 1, 1], [], []>} : vector<32x128xf32>, vector<128x128xf32>, vector<32x128xf32> -> vector<32x128xf32>
    %cst_63 = arith.constant dense<0.000000e+00> : vector<128xf32>
    %74 = vector.multi_reduction <add>, %73, %cst_63 [0] : vector<32x128xf32> to vector<128xf32>
    %75 = vector.shape_cast %74 : vector<128xf32> to vector<1x128xf32>
    %76 = arith.mulf %72, %72 : vector<32x128xf32>
    %cst_64 = arith.constant dense<0.000000e+00> : vector<32x128xf32>
    %77 = tpu.matmul %76, %1, %cst_64 {dimension_numbers = #tpu.dot_dimension_numbers<[1], [0], [0], [1], [0, 0, 1, 1], [], []>} : vector<32x128xf32>, vector<128x128xf32>, vector<32x128xf32> -> vector<32x128xf32>
    %cst_65 = arith.constant dense<0.000000e+00> : vector<128xf32>
    %78 = vector.multi_reduction <add>, %77, %cst_65 [0] : vector<32x128xf32> to vector<128xf32>
    %79 = vector.shape_cast %78 : vector<128xf32> to vector<1x128xf32>
    %cst_66 = arith.constant 0.001953125 : f32
    %80 = vector.broadcast %cst_66 : f32 to vector<1x128xf32>
    %81 = arith.mulf %75, %80 : vector<1x128xf32>
    %cst_67 = arith.constant 0.001953125 : f32
    %82 = vector.broadcast %cst_67 : f32 to vector<1x128xf32>
    %83 = arith.mulf %79, %82 : vector<1x128xf32>
    %84 = arith.mulf %81, %81 : vector<1x128xf32>
    %85 = arith.subf %83, %84 : vector<1x128xf32>
    %c0_68 = arith.constant 0 : index
    %c0_69 = arith.constant 0 : index
    %86 = vector.load %arg6[%c0_68, %c0_69] : memref<1x128xf32, #tpu.memory_space<vmem>>, vector<1x128xf32>
    %cst_70 = arith.constant 9.99999974E-6 : f32
    %87 = vector.broadcast %cst_70 : f32 to vector<1x128xf32>
    %88 = arith.addf %85, %87 : vector<1x128xf32>
    %89 = math.rsqrt %88 : vector<1x128xf32>
    %90 = arith.mulf %86, %89 : vector<1x128xf32>
    %c0_71 = arith.constant 0 : index
    %c0_72 = arith.constant 0 : index
    %91 = vector.load %arg7[%c0_71, %c0_72] : memref<1x128xf32, #tpu.memory_space<vmem>>, vector<1x128xf32>
    %92 = arith.mulf %81, %90 : vector<1x128xf32>
    %93 = arith.subf %91, %92 : vector<1x128xf32>
    %94 = vector.broadcast %90 : vector<1x128xf32> to vector<32x128xf32>
    %95 = arith.mulf %72, %94 : vector<32x128xf32>
    %96 = vector.broadcast %93 : vector<1x128xf32> to vector<32x128xf32>
    %97 = arith.addf %95, %96 : vector<32x128xf32>
    %98 = arith.addf %97, %0 : vector<32x128xf32>
    %cst_73 = arith.constant 0.000000e+00 : f32
    %99 = vector.broadcast %cst_73 : f32 to vector<32x128xf32>
    %100 = arith.maximumf %98, %99 : vector<32x128xf32>
    %c0_74 = arith.constant 0 : index
    %c0_75 = arith.constant 0 : index
    %101 = vector.load %arg9[%c0_74, %c0_75] : memref<32x128xf32, #tpu.memory_space<vmem>>, vector<32x128xf32>
    tpu.vector_store %arg9[%c0_74, %c0_75], %100 {strides = array<i32>} : memref<32x128xf32, #tpu.memory_space<vmem>>, vector<32x128xf32>,
    return
  }
}

</mosaic_0001>

<bundles_post_ra>
// kernel: tpu_custom_call.1
= control target key start
LH: loop header
LB: loop body
LE: loop exit
PB: predicated region body
PF: predicated region fallthrough
CT: control target
= control target key end

     0   :  { %14 = vsyncpa [#allocation3], 0  ;;  %s1463_s0 = inlined_call_operand.hbm [shape: f32[32,128], index: 0, kind: input, shape index: {}]   ;;  %s1464_s1 = inlined_call_operand.hbm [shape: f32[3,32,32], index: 1, kind: input, shape index: {}]   ;;  %s1465_s2 = inlined_call_operand.hbm [shape: f32[3,128,128], index: 2, kind: input, shape index: {}]   ;;  %s1466_s3 = inlined_call_operand.vmem [shape: f32[1,128], index: 3, kind: input, shape index: {}]   ;;  %s1467_s4 = inlined_call_operand.vmem [shape: f32[1,128], index: 4, kind: input, shape index: {}]   ;;  %s1468_s5 = inlined_call_operand.hbm [shape: f32[3,128,128], index: 5, kind: input, shape index: {}]   ;;  %s1469_s6 = inlined_call_operand.vmem [shape: f32[1,128], index: 6, kind: input, shape index: {}]   ;;  %s1470_s7 = inlined_call_operand.vmem [shape: f32[1,128], index: 7, kind: input, shape index: {}]   ;;  %s1471_s8 = inlined_call_operand.hbm [shape: f32[128,128], index: 8, kind: input, shape index: {}]   ;;  %s1472_s9 = inlined_call_operand.hbm [shape: f32[32,128], index: 9, kind: output, shape index: {}]  }
   0x1   :  { %15 = vsyncpa [#allocation6], 0 }
   0x2   :  { %16 = vsyncpa [#allocation9], 0 }
   0x3   :  { %17 = vsyncpa [#allocation4], 0  ;;  %s35_s11 = sshll.u32 %s1464_s1, 4  ;;  %s1127_s12 = smov [#allocation5]   ;;  %s36_s11 = int_to_ptr.hbm [resolvable:$true] %s35_s11 }
   0x4   :  { %s37_s13 = sshll.u32 %s1127_s12, 4  ;;  %s65_s16 = sshll.u32 %s1468_s5, 4  ;;  %s38_s13 = int_to_ptr.vmem [resolvable:$true] %s37_s13  ;;  %s66_s16 = int_to_ptr.hbm [resolvable:$true] %s65_s16 }
   0x5   :  { %s1128_s17 = smov 128   ;;  %s1129_s18 = smov 8  }
   0x6   :  { %43 = dma.hbm_to_vmem [thread:$0]  %s36_s11, 1536, %s38_s13, [#allocation6], %s1128_s17, %s1128_s17, %s1129_s18  }
   0x7   :  { %s1130_s19 = smov [#allocation8]   ;;  %s22_s1 = sshll.u32 %s1463_s0, 4  ;;  %s23_s1 = int_to_ptr.hbm [resolvable:$true] %s22_s1 }
   0x8   :  { %s67_s20 = sshll.u32 %s1130_s19, 4  ;;  %s48_s24 = sshll.u32 %s1465_s2, 4  ;;  %s68_s20 = int_to_ptr.vmem [resolvable:$true] %s67_s20  ;;  %s49_s24 = int_to_ptr.hbm [resolvable:$true] %s48_s24 }
   0x9   :  { %73 = dma.hbm_to_vmem [thread:$0]  %s66_s16, 6144, %s68_s20, [#allocation9], %s1128_s17, %s1128_s17, %s1129_s18  }
   0xa   :  { %s1131_s25 = smov [#allocation2]   ;;  %s1132_s27 = smov [#allocation7]  }
   0xb   :  { %s24_s26 = sshll.u32 %s1131_s25, 4  ;;  %s50_s0 = sshll.u32 %s1132_s27, 4  ;;  %s25_s26 = int_to_ptr.vmem [resolvable:$true] %s24_s26  ;;  %s51_s0 = int_to_ptr.vmem [resolvable:$true] %s50_s0 }
   0xc   :  { %30 = dma.hbm_to_vmem [thread:$0]  %s23_s1, 512, %s25_s26, [#allocation3], %s1128_s17, %s1128_s17, %s1129_s18  }
   0xd   :  { %s82_s30 = sshll.u32 %s1471_s8, 4  ;;  %s1133_s2 = smov [#allocation10]   ;;  %s83_s30 = int_to_ptr.hbm [resolvable:$true] %s82_s30 }
   0xe   :  { %56 = dma.hbm_to_vmem [thread:$0]  %s49_s24, 6144, %s51_s0, [#allocation6], %s1128_s17, %s1128_s17, %s1129_s18  }
   0xf   :  { %s84_s10 = sshll.u32 %s1133_s2, 4  ;;  %s85_s10 = int_to_ptr.vmem [resolvable:$true] %s84_s10 }
  0x10   :  { %90 = dma.hbm_to_vmem [thread:$0]  %s83_s30, 2048, %s85_s10, [#allocation9], %s1128_s17, %s1128_s17, %s1129_s18  }
  0x11   :  { %1119 = dma.done.wait [#allocation3], 512  }
  0x12   :  { %1120 = vsyncadd [#allocation3], 4294966784 }
  0x13   :  { %1121 = dma.done.wait [#allocation6], 7680  }
  0x14   :  { %1122 = vsyncadd [#allocation6], 4294959616 }
  0x15   :  { %1123 = dma.done.wait [#allocation9], 8192  }
  0x16   :  { %1124 = vsyncadd [#allocation9], 4294959104  ;;  %v114_v0 = vld [vmem:[#allocation2 + $0x18] sm:$0xff]  ;;  %v113_v1 = vld [vmem:[#allocation2 + $0x10] sm:$0xff]  ;;  %vm135_vm0 = vcmask 261120   ;;  %s888_s20 = sshll.u32 %s1472_s9, 4  ;;  %s889_s20 = int_to_ptr.hbm [resolvable:$true] %s888_s20 }
  0x17   :  { %160 = vmatpush.msra.mxu0 %v114_v0  ;;  %222 = vmatpush.msra.mxu1 %v114_v0  ;;  %v112_v2 = vld [vmem:[#allocation2 + $0x8] sm:$0xff]  ;;  %v111_v3 = vld [vmem:[#allocation2] sm:$0xff]  ;;  %v1231_v8 = vld [vmem:[#allocation5 + $0x10] sm:$0xff] }
  0x18   :  { %v1215_v4 = vld [vmem:[#allocation5] sm:$0xff]  ;;  %v1223_v6 = vld [vmem:[#allocation5 + $0x8] sm:$0xff]  ;;  %v1233_v9 = vld [vmem:[#allocation5 + $0x30] sm:$0xff] }
  0x19   :  { %161 = vmatpush.msra.mxu0 %v113_v1  ;;  %223 = vmatpush.msra.mxu1 %v113_v1  ;;  %v1217_v5 = vld [vmem:[#allocation5 + $0x20] sm:$0xff]  ;;  %v1225_v7 = vld [vmem:[#allocation5 + $0x28] sm:$0xff]  ;;  %v1239_v10 = vld [vmem:[#allocation5 + $0x18] sm:$0xff] }
  0x1a   :  { %v1241_v11 = vld [vmem:[#allocation5 + $0x38] sm:$0xff]  ;;  %v254_v14 = vld [vmem:[#allocation7 + $0xf0] sm:$0xff]  ;;  %v253_v16 = vld [vmem:[#allocation7 + $0xe8] sm:$0xff] }
  0x1b   :  { %162 = vmatpush.msra.mxu0 %v112_v2  ;;  %224 = vmatpush.msra.mxu1 %v112_v2  ;;  %v255_v12 = vld [vmem:[#allocation7 + $0xf8] sm:$0xff]  ;;  %v191_v15 = vld [vmem:[#allocation7 + $0x70] sm:$0xff]  ;;  %v190_v17 = vld [vmem:[#allocation7 + $0x68] sm:$0xff] }
  0x1c   :  { %v192_v13 = vld [vmem:[#allocation7 + $0x78] sm:$0xff]  ;;  %256 = vmatpush.msra.mxu2 %v255_v12  ;;  %v252_v18 = vld [vmem:[#allocation7 + $0xe0] sm:$0xff]  ;;  %v250_v23 = vld [vmem:[#allocation7 + $0xd0] sm:$0xff] }
  0x1d   :  { %163 = vmatpush.msra.mxu0 %v111_v3  ;;  %225 = vmatpush.msra.mxu1 %v111_v3  ;;  %v189_v19 = vld [vmem:[#allocation7 + $0x60] sm:$0xff]  ;;  %v251_v21 = vld [vmem:[#allocation7 + $0xd8] sm:$0xff]  ;;  %v187_v24 = vld [vmem:[#allocation7 + $0x50] sm:$0xff] }
  0x1e   :  { %903 = vmatmul.msk.f32.vlgmr.msra.gmra.mxu0 %vm135_vm0, %v1215_v4  ;;  %907 = vmatmul.msk.f32.vlgmr.msra.gmra.mxu1 %vm135_vm0, %v1217_v5  ;;  %v1247_v20 = vld [vmem:[#allocation5 + $0x40] sm:$0xff]  ;;  %v188_v22 = vld [vmem:[#allocation7 + $0x58] sm:$0xff]  ;;  %v249_v25 = vld [vmem:[#allocation7 + $0xc8] sm:$0xff] }
  0x1f   :  { %343 = vmatpush.msrb.mxu0 %v114_v0  ;;  %285 = vmatpush.msra.mxu3 %v192_v13  ;;  %v186_v26 = vld [vmem:[#allocation7 + $0x48] sm:$0xff]  ;;  %v248_v27 = vld [vmem:[#allocation7 + $0xc0] sm:$0xff]  ;;  %v247_v30 = vld [vmem:[#allocation7 + $0xb8] sm:$0xff] }
  0x20   :  { %257 = vmatpush.msra.mxu2 %v254_v14  ;;  %v185_v28 = vld [vmem:[#allocation7 + $0x40] sm:$0xff]  ;;  %v1251_v29 = vld [vmem:[#allocation5 + $0x48] sm:$0xff]  ;;  %v184_v31 = vld [vmem:[#allocation7 + $0x38] sm:$0xff] }
  0x21   :  { %344 = vmatpush.msrb.mxu0 %v113_v1  ;;  %286 = vmatpush.msra.mxu3 %v191_v15  ;;  %v246_v32 = vld [vmem:[#allocation7 + $0xb0] sm:$0xff]  ;;  %v245_v34 = vld [vmem:[#allocation7 + $0xa8] sm:$0xff]  ;;  %v244_v36 = vld [vmem:[#allocation7 + $0xa0] sm:$0xff] }
  0x22   :  { %258 = vmatpush.msra.mxu2 %v253_v16  ;;  %v183_v33 = vld [vmem:[#allocation7 + $0x30] sm:$0xff]  ;;  %v182_v35 = vld [vmem:[#allocation7 + $0x28] sm:$0xff]  ;;  %v181_v37 = vld [vmem:[#allocation7 + $0x20] sm:$0xff] }
  0x23   :  { %345 = vmatpush.msrb.mxu0 %v112_v2  ;;  %287 = vmatpush.msra.mxu3 %v190_v17  ;;  %v1255_v38 = vld [vmem:[#allocation5 + $0x50] sm:$0xff]  ;;  %v243_v39 = vld [vmem:[#allocation7 + $0x98] sm:$0xff]  ;;  %v241_v43 = vld [vmem:[#allocation7 + $0x88] sm:$0xff] }
  0x24   :  { %259 = vmatpush.msra.mxu2 %v252_v18  ;;  %v180_v40 = vld [vmem:[#allocation7 + $0x18] sm:$0xff]  ;;  %v242_v41 = vld [vmem:[#allocation7 + $0x90] sm:$0xff]  ;;  %v178_v44 = vld [vmem:[#allocation7 + $0x8] sm:$0xff] }
  0x25   :  { %346 = vmatpush.msrb.mxu0 %v111_v3  ;;  %288 = vmatpush.msra.mxu3 %v189_v19  ;;  %v179_v42 = vld [vmem:[#allocation7 + $0x10] sm:$0xff]  ;;  %v1259_v45 = vld [vmem:[#allocation5 + $0x58] sm:$0xff]  ;;  %v240_v46 = vld [vmem:[#allocation7 + $0x80] sm:$0xff] }
  0x26   :  { %904 = vmatmul.msk.f32.gmra.mxu0 %vm135_vm0, %v1223_v6  ;;  %908 = vmatmul.msk.f32.gmra.mxu1 %vm135_vm0, %v1225_v7  ;;  %v177_v47 = vld [vmem:[#allocation7] sm:$0xff]  ;;  %v376_v48 = vld [vmem:[#allocation7 + $0x178] sm:$0xff]  ;;  %v375_v49 = vld [vmem:[#allocation7 + $0x170] sm:$0xff] }
  0x27   :  { %260 = vmatpush.msra.mxu2 %v251_v21  ;;  %289 = vmatpush.msra.mxu3 %v188_v22  ;;  %v374_v50 = vld [vmem:[#allocation7 + $0x168] sm:$0xff]  ;;  %v373_v51 = vld [vmem:[#allocation7 + $0x160] sm:$0xff]  ;;  %v372_v52 = vld [vmem:[#allocation7 + $0x158] sm:$0xff] }
  0x28   :  { %377 = vmatpush.msrb.mxu1 %v376_v48  ;;  %v371_v53 = vld [vmem:[#allocation7 + $0x150] sm:$0xff]  ;;  %v370_v54 = vld [vmem:[#allocation7 + $0x148] sm:$0xff]  ;;  %v369_v55 = vld [vmem:[#allocation7 + $0x140] sm:$0xff] }
  0x29   :  { %261 = vmatpush.msra.mxu2 %v250_v23  ;;  %290 = vmatpush.msra.mxu3 %v187_v24  ;;  %v368_v56 = vld [vmem:[#allocation7 + $0x138] sm:$0xff]  ;;  %v367_v57 = vld [vmem:[#allocation7 + $0x130] sm:$0xff]  ;;  %v366_v58 = vld [vmem:[#allocation7 + $0x128] sm:$0xff] }
  0x2a   :  { %378 = vmatpush.msrb.mxu1 %v375_v49  ;;  %v365_v59 = vld [vmem:[#allocation7 + $0x120] sm:$0xff]  ;;  %v364_v60 = vld [vmem:[#allocation7 + $0x118] sm:$0xff]  ;;  %v363_v61 = vld [vmem:[#allocation7 + $0x110] sm:$0xff] }
  0x2b   :  { %262 = vmatpush.msra.mxu2 %v249_v25  ;;  %291 = vmatpush.msra.mxu3 %v186_v26  ;;  %v362_v62 = vld [vmem:[#allocation7 + $0x108] sm:$0xff]  ;;  %v361_v63 = vld [vmem:[#allocation7 + $0x100] sm:$0xff]  ;;  %v1263_v16 = vld [vmem:[#allocation10 + $0x78] sm:$0xff] }
  0x2c   :  { %379 = vmatpush.msrb.mxu1 %v374_v50  ;;  %v1267_v22 = vld [vmem:[#allocation10 + $0x70] sm:$0xff]  ;;  %v1271_v23 = vld [vmem:[#allocation10 + $0x68] sm:$0xff]  ;;  %v1273_v24 = vld [vmem:[#allocation10 + $0x60] sm:$0xff] }
  0x2d   :  { %263 = vmatpush.msra.mxu2 %v248_v27  ;;  %292 = vmatpush.msra.mxu3 %v185_v28  ;;  %v1277_v25 = vld [vmem:[#allocation10 + $0x58] sm:$0xff]  ;;  %v1283_v26 = vld [vmem:[#allocation10 + $0x50] sm:$0xff]  ;;  %v1287_v27 = vld [vmem:[#allocation10 + $0x48] sm:$0xff] }
  0x2e   :  { %905 = vmatmul.msk.f32.gmra.mxu0 %vm135_vm0, %v1231_v8  ;;  %909 = vmatmul.msk.f32.gmra.mxu1 %vm135_vm0, %v1233_v9  ;;  %v1289_v28 = vld [vmem:[#allocation10 + $0x40] sm:$0xff] }
  0x2f   :  { %264 = vmatpush.msra.mxu2 %v247_v30  ;;  %293 = vmatpush.msra.mxu3 %v184_v31  ;;  %v1293_v30 = vld [vmem:[#allocation10 + $0x38] sm:$0xff]  ;;  %v1299_v31 = vld [vmem:[#allocation10 + $0x30] sm:$0xff] }
  0x30   :  { %380 = vmatpush.msrb.mxu1 %v373_v51 }
  0x31   :  { %265 = vmatpush.msra.mxu2 %v246_v32  ;;  %294 = vmatpush.msra.mxu3 %v183_v33  ;;  %v1303_v32 = vld [vmem:[#allocation10 + $0x28] sm:$0xff]  ;;  %v1305_v33 = vld [vmem:[#allocation10 + $0x20] sm:$0xff] }
  0x32   :  { %381 = vmatpush.msrb.mxu1 %v372_v52 }
  0x33   :  { %266 = vmatpush.msra.mxu2 %v245_v34  ;;  %295 = vmatpush.msra.mxu3 %v182_v35  ;;  %v1309_v34 = vld [vmem:[#allocation10 + $0x18] sm:$0xff]  ;;  %v1315_v35 = vld [vmem:[#allocation10 + $0x10] sm:$0xff] }
  0x34   :  { %382 = vmatpush.msrb.mxu1 %v371_v53 }
  0x35   :  { %267 = vmatpush.msra.mxu2 %v244_v36  ;;  %296 = vmatpush.msra.mxu3 %v181_v37  ;;  %v1319_v36 = vld [vmem:[#allocation10 + $0x8] sm:$0xff]  ;;  %v1323_v37 = vld [vmem:[#allocation10] sm:$0xff] }
  0x36   :  { %906 = vmatmul.msk.f32.gmra.mxu0 %vm135_vm0, %v1239_v10  ;;  %910 = vmatmul.msk.f32.gmra.mxu1 %vm135_vm0, %v1241_v11 }
  0x37   :  { %268 = vmatpush.msra.mxu2 %v243_v39  ;;  %297 = vmatpush.msra.mxu3 %v180_v40 }
  0x38   :  { %383 = vmatpush.msrb.mxu1 %v370_v54 }
  0x39   :  { %269 = vmatpush.msra.mxu2 %v242_v41  ;;  %298 = vmatpush.msra.mxu3 %v179_v42 }
  0x3a   :  { %384 = vmatpush.msrb.mxu1 %v369_v55 }
  0x3b   :  { %270 = vmatpush.msra.mxu2 %v241_v43  ;;  %299 = vmatpush.msra.mxu3 %v178_v44 }
  0x3c   :  { %385 = vmatpush.msrb.mxu1 %v368_v56 }
  0x3d   :  { %271 = vmatpush.msra.mxu2 %v240_v46  ;;  %300 = vmatpush.msra.mxu3 %v177_v47 }
  0x3e   :  { %911 = vmatmul.msk.f32.vlgmr.msrb.gmra.mxu0 %vm135_vm0, %v1247_v20  ;;  %386 = vmatpush.msrb.mxu1 %v367_v57 }
  0x3f   :  { %410 = vmatpush.msrb.mxu2 %v1263_v16  ;;  %452 = vmatpush.msrb.mxu3 %v1263_v16 }
  0x40   :  { %387 = vmatpush.msrb.mxu1 %v366_v58 }
  0x41   :  { %411 = vmatpush.msrb.mxu2 %v1267_v22  ;;  %453 = vmatpush.msrb.mxu3 %v1267_v22 }
  0x42   :  { %388 = vmatpush.msrb.mxu1 %v365_v59 }
  0x43   :  { %412 = vmatpush.msrb.mxu2 %v1271_v23  ;;  %454 = vmatpush.msrb.mxu3 %v1271_v23 }
  0x44   :  { %389 = vmatpush.msrb.mxu1 %v364_v60 }
  0x45   :  { %413 = vmatpush.msrb.mxu2 %v1273_v24  ;;  %455 = vmatpush.msrb.mxu3 %v1273_v24 }
  0x46   :  { %912 = vmatmul.msk.f32.gmra.mxu0 %vm135_vm0, %v1251_v29  ;;  %390 = vmatpush.msrb.mxu1 %v363_v61 }
  0x47   :  { %414 = vmatpush.msrb.mxu2 %v1277_v25  ;;  %456 = vmatpush.msrb.mxu3 %v1277_v25 }
  0x48   :  { %391 = vmatpush.msrb.mxu1 %v362_v62 }
  0x49   :  { %415 = vmatpush.msrb.mxu2 %v1283_v26  ;;  %457 = vmatpush.msrb.mxu3 %v1283_v26 }
  0x4a   :  { %392 = vmatpush.msrb.mxu1 %v361_v63 }
  0x4b   :  { %416 = vmatpush.msrb.mxu2 %v1287_v27  ;;  %458 = vmatpush.msrb.mxu3 %v1287_v27 }
  0x4d   :  { %417 = vmatpush.msrb.mxu2 %v1289_v28  ;;  %459 = vmatpush.msrb.mxu3 %v1289_v28 }
  0x4e   :  { %913 = vmatmul.msk.f32.gmra.mxu0 %vm135_vm0, %v1255_v38 }
  0x4f   :  { %418 = vmatpush.msrb.mxu2 %v1293_v30  ;;  %460 = vmatpush.msrb.mxu3 %v1293_v30 }
  0x51   :  { %419 = vmatpush.msrb.mxu2 %v1299_v31  ;;  %461 = vmatpush.msrb.mxu3 %v1299_v31 }
  0x53   :  { %420 = vmatpush.msrb.mxu2 %v1303_v32  ;;  %462 = vmatpush.msrb.mxu3 %v1303_v32 }
  0x55   :  { %421 = vmatpush.msrb.mxu2 %v1305_v33  ;;  %463 = vmatpush.msrb.mxu3 %v1305_v33 }
  0x56   :  { %914 = vmatmul.msk.f32.gmra.mxu0 %vm135_vm0, %v1259_v45 }
  0x57   :  { %422 = vmatpush.msrb.mxu2 %v1309_v34  ;;  %464 = vmatpush.msrb.mxu3 %v1309_v34 }
  0x59   :  { %423 = vmatpush.msrb.mxu2 %v1315_v35  ;;  %465 = vmatpush.msrb.mxu3 %v1315_v35 }
  0x5b   :  { %424 = vmatpush.msrb.mxu2 %v1319_v36  ;;  %466 = vmatpush.msrb.mxu3 %v1319_v36 }
  0x5d   :  { %425 = vmatpush.msrb.mxu2 %v1323_v37  ;;  %467 = vmatpush.msrb.mxu3 %v1323_v37 }
  0x9b   :  { %v165_v0 = vpop.f32.mrf.mxu0  ;;  %v227_v1 = vpop.f32.mrf.mxu1 }
  0x9c   :  { %272 = vmatmul.f32.vlgmr.msra.gmra.mxu2 %v227_v1  ;;  %301 = vmatmul.f32.vlgmr.msra.gmra.mxu3 %v165_v0 }
  0xa3   :  { %v168_v2 = vpop.f32.mrf.mxu0  ;;  %v230_v3 = vpop.f32.mrf.mxu1 }
  0xa4   :  { %275 = vmatmul.f32.gmra.mxu2 %v230_v3  ;;  %304 = vmatmul.f32.gmra.mxu3 %v168_v2 }
  0xab   :  { %v171_v12 = vpop.f32.mrf.mxu0  ;;  %v233_v13 = vpop.f32.mrf.mxu1 }
  0xac   :  { %278 = vmatmul.f32.gmra.mxu2 %v233_v13  ;;  %307 = vmatmul.f32.gmra.mxu3 %v171_v12 }
  0xb3   :  { %v174_v14 = vpop.f32.mrf.mxu0  ;;  %v236_v15 = vpop.f32.mrf.mxu1 }
  0xb4   :  { %281 = vmatmul.f32.gmra.mxu2 %v236_v15  ;;  %310 = vmatmul.f32.gmra.mxu3 %v174_v14 }
  0xbb   :  { %v348_v17 = vpop.f32.mrf.mxu0 }
  0xbc   :  { %393 = vmatmul.f32.vlgmr.msrb.gmra.mxu1 %v348_v17 }
  0xc3   :  { %v351_v18 = vpop.f32.mrf.mxu0 }
  0xc4   :  { %396 = vmatmul.f32.gmra.mxu1 %v351_v18 }
  0xcb   :  { %v354_v19 = vpop.f32.mrf.mxu0 }
  0xcc   :  { %399 = vmatmul.f32.gmra.mxu1 %v354_v19 }
  0xd3   :  { %v357_v21 = vpop.f32.mrf.mxu0 }
  0xd4   :  { %402 = vmatmul.f32.gmra.mxu1 %v357_v21 }
 0x11f   :  { %v273_v39 = vpop.f32.mrf.mxu2  ;;  %v302_v40 = vpop.f32.mrf.mxu3 }
 0x120   :  { %v303_v41 = vadd.f32 %v302_v40, %v273_v39 }
 0x127   :  { %v276_v42 = vpop.f32.mrf.mxu2  ;;  %v305_v43 = vpop.f32.mrf.mxu3 }
 0x128   :  { %v306_v48 = vadd.f32 %v305_v43, %v276_v42 }
 0x12f   :  { %v279_v51 = vpop.f32.mrf.mxu2  ;;  %v308_v52 = vpop.f32.mrf.mxu3 }
 0x130   :  { %v309_v54 = vadd.f32 %v308_v52, %v279_v51 }
 0x137   :  { %v282_v58 = vpop.f32.mrf.mxu2  ;;  %v311_v59 = vpop.f32.mrf.mxu3 }
 0x138   :  { %v312_v60 = vadd.f32 %v311_v59, %v282_v58 }
 0x139   :  { %v394_v44 = vpop.f32.mrf.mxu1 }
 0x13a   :  { %v1327_v46 = vadd.f32 %v394_v44, %v303_v41 }
 0x13c   :  { %426 = vmatmul.f32.vlgmr.msrb.gmra.mxu2 %v1327_v46  ;;  %v448_v47 = vmul.f32 %v1327_v46, %v1327_v46 }
 0x13e   :  { %468 = vmatmul.f32.vlgmr.msrb.gmra.mxu3 %v448_v47 }
 0x141   :  { %v397_v49 = vpop.f32.mrf.mxu1 }
 0x142   :  { %v1332_v50 = vadd.f32 %v397_v49, %v306_v48 }
 0x144   :  { %429 = vmatmul.f32.gmra.mxu2 %v1332_v50  ;;  %v449_v53 = vmul.f32 %v1332_v50, %v1332_v50 }
 0x146   :  { %471 = vmatmul.f32.gmra.mxu3 %v449_v53 }
 0x149   :  { %v400_v55 = vpop.f32.mrf.mxu1 }
 0x14a   :  { %v408_v56 = vadd.f32 %v400_v55, %v309_v54 }
 0x14c   :  { %432 = vmatmul.f32.gmra.mxu2 %v408_v56  ;;  %v450_v57 = vmul.f32 %v408_v56, %v408_v56 }
 0x14e   :  { %474 = vmatmul.f32.gmra.mxu3 %v450_v57 }
 0x151   :  { %v403_v61 = vpop.f32.mrf.mxu1 }
 0x152   :  { %v409_v62 = vadd.f32 %v403_v61, %v312_v60 }
 0x154   :  { %435 = vmatmul.f32.gmra.mxu2 %v409_v62  ;;  %v451_v63 = vmul.f32 %v409_v62, %v409_v62 }
 0x156   :  { %477 = vmatmul.f32.gmra.mxu3 %v451_v63 }
 0x1bf   :  { %v427_v0 = vpop.f32.mrf.mxu2 }
 0x1c1   :  { %v469_v1 = vpop.f32.mrf.mxu3 }
 0x1c7   :  { %v430_v2 = vpop.f32.mrf.mxu2 }
 0x1c8   :  { %v439_v14 = vadd.f32 %v430_v2, %v427_v0 }
 0x1c9   :  { %v472_v3 = vpop.f32.mrf.mxu3 }
 0x1ca   :  { %v481_v15 = vadd.f32 %v472_v3, %v469_v1 }
 0x1cf   :  { %v433_v12 = vpop.f32.mrf.mxu2 }
 0x1d0   :  { %v440_v17 = vadd.f32 %v439_v14, %v433_v12  ;;  %v494_v12 = vld [vmem:[%s1466_s3] sm:$0x1] }
 0x1d1   :  { %v475_v13 = vpop.f32.mrf.mxu3 }
 0x1d2   :  { %v482_v19 = vadd.f32 %v481_v15, %v475_v13 }
 0x1d7   :  { %v436_v18 = vpop.f32.mrf.mxu2 }
 0x1d8   :  { %v441_v21 = vadd.f32 %v440_v17, %v436_v18  ;;  %v507_v17 = vld [vmem:[%s1467_s4] sm:$0x1] }
 0x1d9   :  { %v478_v39 = vpop.f32.mrf.mxu3 }
 0x1da   :  { %v442_v40 = vrot.slane %v441_v21, 4  ;;  %v483_v41 = vadd.f32 %v482_v19, %v478_v39 }
 0x1dc   :  { %v443_v42 = vadd.f32 %v442_v40, %v441_v21  ;;  %v484_v43 = vrot.slane %v483_v41, 4 }
 0x1de   :  { %v444_v44 = vrot.slane %v443_v42, 2  ;;  %v485_v47 = vadd.f32 %v484_v43, %v483_v41 }
 0x1e0   :  { %v445_v48 = vadd.f32 %v444_v44, %v443_v42  ;;  %v486_v49 = vrot.slane %v485_v47, 2 }
 0x1e2   :  { %v446_v51 = vrot.slane %v445_v48, 1  ;;  %v487_v52 = vadd.f32 %v486_v49, %v485_v47 }
 0x1e4   :  { %v447_v53 = vadd.f32 %v446_v51, %v445_v48  ;;  %v488_v54 = vrot.slane %v487_v52, 1 }
 0x1e6   :  { %v490_v55 = vmul.f32 0.001953125, %v447_v53  ;;  %v489_v57 = vadd.f32 %v488_v54, %v487_v52  ;;  %v566_v54 = vld [vmem:[#allocation8 + $0x48] sm:$0xff] }
 0x1e8   :  { %v492_v58 = vmul.f32 %v490_v55, %v490_v55  ;;  %v491_v59 = vmul.f32 0.001953125, %v489_v57  ;;  %v564_v57 = vld [vmem:[#allocation8 + $0x38] sm:$0xff] }
 0x1ea   :  { %v493_v60 = vsub.f32 %v491_v59, %v492_v58  ;;  %v609_v58 = vld [vmem:[#allocation8 + $0xb0] sm:$0xff] }
 0x1eb   :  { %v563_v59 = vld [vmem:[#allocation8 + $0x30] sm:$0xff] }
 0x1ec   :  { %v495_v61 = vadd.f32 1e-05, %v493_v60  ;;  %v608_v60 = vld [vmem:[#allocation8 + $0xa8] sm:$0xff] }
 0x1ee   :  { %967 = vrsqrt.f32 %v495_v61  ;;  %vm502_vm2 = vweird.f32 %v495_v61 }
 0x1f4   :  { %v968_v63 = vpop.eup %967 }
 0x1f5   :  { %v497_v0 = vmul.f32 %v968_v63, %v495_v61  ;;  %vm503_vm1 = vweird.f32 %v968_v63  ;;  %v562_v61 = vld [vmem:[#allocation8 + $0x28] sm:$0xff] }
 0x1f6   :  { %vm504_vm3 = vmor %vm502_vm2, %vm503_vm1 }
 0x1f7   :  { %v498_v1 = vmul.f32 %v968_v63, %v497_v0  ;;  %v561_v0 = vld [vmem:[#allocation8 + $0x20] sm:$0xff] }
 0x1f9   :  { %v499_v2 = vmul.f32 0.5, %v498_v1  ;;  %v606_v1 = vld [vmem:[#allocation8 + $0x98] sm:$0xff] }
 0x1fb   :  { %v500_v3 = vsub.f32 1.5, %v499_v2  ;;  %v560_v2 = vld [vmem:[#allocation8 + $0x18] sm:$0xff] }
 0x1fd   :  { %v501_v13 = vmul.f32 %v968_v63, %v500_v3  ;;  %v605_v3 = vld [vmem:[#allocation8 + $0x90] sm:$0xff] }
 0x1ff   :  { %v505_v14 = vsel %vm504_vm3, %v968_v63, %v501_v13  ;;  %v607_v63 = vld [vmem:[#allocation8 + $0xa0] sm:$0xff]  ;;  %v604_v13 = vld [vmem:[#allocation8 + $0x88] sm:$0xff] }
 0x200   :  { %v506_v15 = vmul.f32 %v505_v14, %v494_v12  ;;  %v559_v12 = vld [vmem:[#allocation8 + $0x10] sm:$0xff]  ;;  %v558_v14 = vld [vmem:[#allocation8 + $0x8] sm:$0xff] }
 0x202   :  { %v508_v18 = vmul.f32 %v506_v15, %v490_v55  ;;  %v511_v19 = vperm.slane %v506_v15, 0  ;;  %v565_v55 = vld [vmem:[#allocation8 + $0x40] sm:$0xff]  ;;  %v722_v15 = vld [vmem:[#allocation8 + $0x178] sm:$0xff] }
 0x204   :  { %v509_v21 = vsub.f32 %v507_v17, %v508_v18  ;;  %v516_v39 = vmul.f32 %v511_v19, %v409_v62  ;;  %v515_v41 = vmul.f32 %v511_v19, %v408_v56  ;;  %v514_v44 = vmul.f32 %v511_v19, %v1332_v50  ;;  %v613_v50 = vld [vmem:[#allocation8 + $0xd0] sm:$0xff]  ;;  %v603_v18 = vld [vmem:[#allocation8 + $0x80] sm:$0xff] }
 0x205   :  { %v513_v49 = vmul.f32 %v511_v19, %v1327_v46  ;;  %v568_v46 = vld [vmem:[#allocation8 + $0x58] sm:$0xff]  ;;  %v567_v56 = vld [vmem:[#allocation8 + $0x50] sm:$0xff]  ;;  %v557_v19 = vld [vmem:[#allocation8] sm:$0xff] }
 0x206   :  { %v518_v40 = vperm.slane %v509_v21, 0  ;;  %v721_v17 = vld [vmem:[#allocation8 + $0x170] sm:$0xff]  ;;  %v720_v21 = vld [vmem:[#allocation8 + $0x168] sm:$0xff] }
 0x208   :  { %v523_v42 = vadd.f32 %v518_v40, %v516_v39  ;;  %v522_v43 = vadd.f32 %v518_v40, %v515_v41  ;;  %v521_v48 = vadd.f32 %v518_v40, %v514_v44  ;;  %v520_v52 = vadd.f32 %v518_v40, %v513_v49  ;;  %v719_v39 = vld [vmem:[#allocation8 + $0x160] sm:$0xff]  ;;  %v718_v40 = vld [vmem:[#allocation8 + $0x158] sm:$0xff]  ;;  %v717_v41 = vld [vmem:[#allocation8 + $0x150] sm:$0xff] }
 0x209   :  { %v714_v44 = vld [vmem:[#allocation8 + $0x138] sm:$0xff]  ;;  %v711_v49 = vld [vmem:[#allocation8 + $0x120] sm:$0xff] }
 0x20a   :  { %v527_v47 = vmax.f32 %v523_v42, 0.0  ;;  %v526_v51 = vmax.f32 %v522_v43, 0.0  ;;  %v525_v53 = vmax.f32 %v521_v48, 0.0  ;;  %v524_v62 = vmax.f32 %v520_v52, 0.0  ;;  %v716_v42 = vld [vmem:[#allocation8 + $0x148] sm:$0xff]  ;;  %v715_v43 = vld [vmem:[#allocation8 + $0x140] sm:$0xff] }
 0x20b   :  { %v712_v48 = vld [vmem:[#allocation8 + $0x128] sm:$0xff]  ;;  %v709_v52 = vld [vmem:[#allocation8 + $0x110] sm:$0xff] }
 0x20c   :  { %540 = vmatpush.msra.mxu0 %v527_v47  ;;  %585 = vmatpush.msra.mxu1 %v527_v47 }
 0x20e   :  { %541 = vmatpush.msra.mxu0 %v526_v51  ;;  %586 = vmatpush.msra.mxu1 %v526_v51 }
 0x210   :  { %542 = vmatpush.msra.mxu0 %v525_v53  ;;  %587 = vmatpush.msra.mxu1 %v525_v53 }
 0x212   :  { %543 = vmatpush.msra.mxu0 %v524_v62  ;;  %588 = vmatpush.msra.mxu1 %v524_v62 }
 0x213   :  { %915 = vmatmul.msk.f32.vlgmr.msra.gmra.mxu0 %vm135_vm0, %v1215_v4  ;;  %919 = vmatmul.msk.f32.vlgmr.msra.gmra.mxu1 %vm135_vm0, %v1217_v5  ;;  %v618_v4 = vld [vmem:[#allocation8 + $0xf8] sm:$0xff] }
 0x214   :  { %689 = vmatpush.msrb.mxu0 %v527_v47  ;;  %v572_v5 = vld [vmem:[#allocation8 + $0x78] sm:$0xff]  ;;  %619 = vmatpush.msra.mxu2 %v618_v4  ;;  %v713_v47 = vld [vmem:[#allocation8 + $0x130] sm:$0xff] }
 0x215   :  { %648 = vmatpush.msra.mxu3 %v572_v5  ;;  %723 = vmatpush.msrb.mxu1 %v722_v15  ;;  %v707_v5 = vld [vmem:[#allocation8 + $0x100] sm:$0xff] }
 0x216   :  { %690 = vmatpush.msrb.mxu0 %v526_v51  ;;  %v710_v51 = vld [vmem:[#allocation8 + $0x118] sm:$0xff] }
 0x217   :  { %724 = vmatpush.msrb.mxu1 %v721_v17 }
 0x218   :  { %691 = vmatpush.msrb.mxu0 %v525_v53  ;;  %v708_v53 = vld [vmem:[#allocation8 + $0x108] sm:$0xff] }
 0x219   :  { %725 = vmatpush.msrb.mxu1 %v720_v21 }
 0x21a   :  { %692 = vmatpush.msrb.mxu0 %v524_v62 }
 0x21b   :  { %916 = vmatmul.msk.f32.gmra.mxu0 %vm135_vm0, %v1223_v6  ;;  %920 = vmatmul.msk.f32.gmra.mxu1 %vm135_vm0, %v1225_v7  ;;  %v617_v6 = vld [vmem:[#allocation8 + $0xf0] sm:$0xff] }
 0x21c   :  { %756 = vmatpush.msra.mxu0 %v1263_v16  ;;  %v571_v7 = vld [vmem:[#allocation8 + $0x70] sm:$0xff]  ;;  %620 = vmatpush.msra.mxu2 %v617_v6 }
 0x21d   :  { %649 = vmatpush.msra.mxu3 %v571_v7  ;;  %726 = vmatpush.msrb.mxu1 %v719_v39 }
 0x21e   :  { %757 = vmatpush.msra.mxu0 %v1267_v22 }
 0x21f   :  { %727 = vmatpush.msrb.mxu1 %v718_v40 }
 0x220   :  { %758 = vmatpush.msra.mxu0 %v1271_v23 }
 0x221   :  { %728 = vmatpush.msrb.mxu1 %v717_v41 }
 0x222   :  { %759 = vmatpush.msra.mxu0 %v1273_v24 }
 0x223   :  { %917 = vmatmul.msk.f32.gmra.mxu0 %vm135_vm0, %v1231_v8  ;;  %921 = vmatmul.msk.f32.gmra.mxu1 %vm135_vm0, %v1233_v9  ;;  %v616_v8 = vld [vmem:[#allocation8 + $0xe8] sm:$0xff] }
 0x224   :  { %760 = vmatpush.msra.mxu0 %v1277_v25  ;;  %v570_v9 = vld [vmem:[#allocation8 + $0x68] sm:$0xff]  ;;  %621 = vmatpush.msra.mxu2 %v616_v8 }
 0x225   :  { %650 = vmatpush.msra.mxu3 %v570_v9  ;;  %729 = vmatpush.msrb.mxu1 %v716_v42 }
 0x226   :  { %761 = vmatpush.msra.mxu0 %v1283_v26 }
 0x227   :  { %730 = vmatpush.msrb.mxu1 %v715_v43 }
 0x228   :  { %762 = vmatpush.msra.mxu0 %v1287_v27 }
 0x229   :  { %731 = vmatpush.msrb.mxu1 %v714_v44 }
 0x22a   :  { %763 = vmatpush.msra.mxu0 %v1289_v28 }
 0x22b   :  { %918 = vmatmul.msk.f32.gmra.mxu0 %vm135_vm0, %v1239_v10  ;;  %922 = vmatmul.msk.f32.gmra.mxu1 %vm135_vm0, %v1241_v11  ;;  %v615_v10 = vld [vmem:[#allocation8 + $0xe0] sm:$0xff] }
 0x22c   :  { %764 = vmatpush.msra.mxu0 %v1293_v30  ;;  %v569_v11 = vld [vmem:[#allocation8 + $0x60] sm:$0xff]  ;;  %622 = vmatpush.msra.mxu2 %v615_v10 }
 0x22d   :  { %651 = vmatpush.msra.mxu3 %v569_v11  ;;  %732 = vmatpush.msrb.mxu1 %v713_v47 }
 0x22e   :  { %765 = vmatpush.msra.mxu0 %v1299_v31 }
 0x22f   :  { %652 = vmatpush.msra.mxu3 %v568_v46  ;;  %733 = vmatpush.msrb.mxu1 %v712_v48 }
 0x230   :  { %766 = vmatpush.msra.mxu0 %v1303_v32 }
 0x231   :  { %653 = vmatpush.msra.mxu3 %v567_v56  ;;  %734 = vmatpush.msrb.mxu1 %v711_v49 }
 0x232   :  { %767 = vmatpush.msra.mxu0 %v1305_v33 }
 0x233   :  { %923 = vmatmul.msk.f32.vlgmr.msrb.gmra.mxu0 %vm135_vm0, %v1247_v20  ;;  %v614_v20 = vld [vmem:[#allocation8 + $0xd8] sm:$0xff]  ;;  %654 = vmatpush.msra.mxu3 %v566_v54 }
 0x234   :  { %768 = vmatpush.msra.mxu0 %v1309_v34  ;;  %623 = vmatpush.msra.mxu2 %v614_v20 }
 0x235   :  { %655 = vmatpush.msra.mxu3 %v565_v55  ;;  %735 = vmatpush.msrb.mxu1 %v710_v51 }
 0x236   :  { %769 = vmatpush.msra.mxu0 %v1315_v35  ;;  %624 = vmatpush.msra.mxu2 %v613_v50 }
 0x237   :  { %656 = vmatpush.msra.mxu3 %v564_v57  ;;  %736 = vmatpush.msrb.mxu1 %v709_v52 }
 0x238   :  { %770 = vmatpush.msra.mxu0 %v1319_v36 }
 0x239   :  { %657 = vmatpush.msra.mxu3 %v563_v59  ;;  %737 = vmatpush.msrb.mxu1 %v708_v53 }
 0x23a   :  { %771 = vmatpush.msra.mxu0 %v1323_v37 }
 0x23b   :  { %924 = vmatmul.msk.f32.gmra.mxu0 %vm135_vm0, %v1251_v29  ;;  %v612_v29 = vld [vmem:[#allocation8 + $0xc8] sm:$0xff]  ;;  %658 = vmatpush.msra.mxu3 %v562_v61 }
 0x23c   :  { %625 = vmatpush.msra.mxu2 %v612_v29  ;;  %738 = vmatpush.msrb.mxu1 %v707_v5 }
 0x23d   :  { %659 = vmatpush.msra.mxu3 %v561_v0 }
 0x23e   :  { %798 = vmatpush.msra.mxu1 %v1263_v16 }
 0x23f   :  { %660 = vmatpush.msra.mxu3 %v560_v2 }
 0x240   :  { %799 = vmatpush.msra.mxu1 %v1267_v22 }
 0x241   :  { %661 = vmatpush.msra.mxu3 %v559_v12 }
 0x242   :  { %800 = vmatpush.msra.mxu1 %v1271_v23 }
 0x243   :  { %925 = vmatmul.msk.f32.gmra.mxu0 %vm135_vm0, %v1255_v38  ;;  %v611_v38 = vld [vmem:[#allocation8 + $0xc0] sm:$0xff]  ;;  %662 = vmatpush.msra.mxu3 %v558_v14 }
 0x244   :  { %626 = vmatpush.msra.mxu2 %v611_v38  ;;  %801 = vmatpush.msra.mxu1 %v1273_v24 }
 0x245   :  { %663 = vmatpush.msra.mxu3 %v557_v19 }
 0x246   :  { %802 = vmatpush.msra.mxu1 %v1277_v25 }
 0x247   :  { %943 = vmatpush.msrb.mxu3 %v1263_v16 }
 0x248   :  { %803 = vmatpush.msra.mxu1 %v1283_v26 }
 0x249   :  { %944 = vmatpush.msrb.mxu3 %v1267_v22 }
 0x24a   :  { %804 = vmatpush.msra.mxu1 %v1287_v27 }
 0x24b   :  { %926 = vmatmul.msk.f32.gmra.mxu0 %vm135_vm0, %v1259_v45  ;;  %v610_v45 = vld [vmem:[#allocation8 + $0xb8] sm:$0xff]  ;;  %945 = vmatpush.msrb.mxu3 %v1271_v23 }
 0x24c   :  { %627 = vmatpush.msra.mxu2 %v610_v45  ;;  %805 = vmatpush.msra.mxu1 %v1289_v28 }
 0x24d   :  { %946 = vmatpush.msrb.mxu3 %v1273_v24 }
 0x24e   :  { %628 = vmatpush.msra.mxu2 %v609_v58  ;;  %806 = vmatpush.msra.mxu1 %v1293_v30 }
 0x24f   :  { %947 = vmatpush.msrb.mxu3 %v1277_v25 }
 0x250   :  { %629 = vmatpush.msra.mxu2 %v608_v60  ;;  %807 = vmatpush.msra.mxu1 %v1299_v31 }
 0x251   :  { %948 = vmatpush.msrb.mxu3 %v1283_v26 }
 0x252   :  { %630 = vmatpush.msra.mxu2 %v607_v63  ;;  %808 = vmatpush.msra.mxu1 %v1303_v32 }
 0x253   :  { %949 = vmatpush.msrb.mxu3 %v1287_v27 }
 0x254   :  { %631 = vmatpush.msra.mxu2 %v606_v1  ;;  %809 = vmatpush.msra.mxu1 %v1305_v33 }
 0x255   :  { %950 = vmatpush.msrb.mxu3 %v1289_v28 }
 0x256   :  { %632 = vmatpush.msra.mxu2 %v605_v3  ;;  %810 = vmatpush.msra.mxu1 %v1309_v34 }
 0x257   :  { %951 = vmatpush.msrb.mxu3 %v1293_v30 }
 0x258   :  { %633 = vmatpush.msra.mxu2 %v604_v13  ;;  %811 = vmatpush.msra.mxu1 %v1315_v35 }
 0x259   :  { %952 = vmatpush.msrb.mxu3 %v1299_v31 }
 0x25a   :  { %634 = vmatpush.msra.mxu2 %v603_v18  ;;  %812 = vmatpush.msra.mxu1 %v1319_v36 }
 0x25b   :  { %953 = vmatpush.msrb.mxu3 %v1303_v32 }
 0x25c   :  { %927 = vmatpush.msrb.mxu2 %v1263_v16  ;;  %813 = vmatpush.msra.mxu1 %v1323_v37 }
 0x25d   :  { %954 = vmatpush.msrb.mxu3 %v1305_v33 }
 0x25e   :  { %928 = vmatpush.msrb.mxu2 %v1267_v22 }
 0x25f   :  { %955 = vmatpush.msrb.mxu3 %v1309_v34 }
 0x260   :  { %929 = vmatpush.msrb.mxu2 %v1271_v23 }
 0x261   :  { %956 = vmatpush.msrb.mxu3 %v1315_v35 }
 0x262   :  { %930 = vmatpush.msrb.mxu2 %v1273_v24 }
 0x263   :  { %957 = vmatpush.msrb.mxu3 %v1319_v36 }
 0x264   :  { %931 = vmatpush.msrb.mxu2 %v1277_v25 }
 0x265   :  { %958 = vmatpush.msrb.mxu3 %v1323_v37 }
 0x266   :  { %932 = vmatpush.msrb.mxu2 %v1283_v26 }
 0x268   :  { %933 = vmatpush.msrb.mxu2 %v1287_v27 }
 0x26a   :  { %934 = vmatpush.msrb.mxu2 %v1289_v28 }
 0x26c   :  { %935 = vmatpush.msrb.mxu2 %v1293_v30 }
 0x26e   :  { %936 = vmatpush.msrb.mxu2 %v1299_v31 }
 0x270   :  { %937 = vmatpush.msrb.mxu2 %v1303_v32 }
 0x272   :  { %938 = vmatpush.msrb.mxu2 %v1305_v33 }
 0x274   :  { %939 = vmatpush.msrb.mxu2 %v1309_v34 }
 0x276   :  { %940 = vmatpush.msrb.mxu2 %v1315_v35 }
 0x278   :  { %941 = vmatpush.msrb.mxu2 %v1319_v36 }
 0x27a   :  { %942 = vmatpush.msrb.mxu2 %v1323_v37 }
 0x290   :  { %v545_v62 = vpop.f32.mrf.mxu0  ;;  %v590_v4 = vpop.f32.mrf.mxu1 }
 0x291   :  { %635 = vmatmul.f32.vlgmr.msra.gmra.mxu2 %v590_v4  ;;  %664 = vmatmul.f32.vlgmr.msra.gmra.mxu3 %v545_v62 }
 0x298   :  { %v548_v6 = vpop.f32.mrf.mxu0  ;;  %v593_v7 = vpop.f32.mrf.mxu1 }
 0x299   :  { %638 = vmatmul.f32.gmra.mxu2 %v593_v7  ;;  %667 = vmatmul.f32.gmra.mxu3 %v548_v6 }
 0x2a0   :  { %v551_v8 = vpop.f32.mrf.mxu0  ;;  %v596_v9 = vpop.f32.mrf.mxu1 }
 0x2a1   :  { %641 = vmatmul.f32.gmra.mxu2 %v596_v9  ;;  %670 = vmatmul.f32.gmra.mxu3 %v551_v8 }
 0x2a8   :  { %v554_v16 = vpop.f32.mrf.mxu0  ;;  %v599_v22 = vpop.f32.mrf.mxu1 }
 0x2a9   :  { %644 = vmatmul.f32.gmra.mxu2 %v599_v22  ;;  %673 = vmatmul.f32.gmra.mxu3 %v554_v16 }
 0x2b0   :  { %v694_v23 = vpop.f32.mrf.mxu0 }
 0x2b1   :  { %739 = vmatmul.f32.vlgmr.msrb.gmra.mxu1 %v694_v23  ;;  %v840_v23 = vld [vmem:[%s1469_s6] sm:$0x1]  ;;  %s1134_s6 = smov [#allocation11]  }
 0x2b8   :  { %v697_v24 = vpop.f32.mrf.mxu0 }
 0x2b9   :  { %742 = vmatmul.f32.gmra.mxu1 %v697_v24 }
 0x2c0   :  { %v700_v25 = vpop.f32.mrf.mxu0 }
 0x2c1   :  { %745 = vmatmul.f32.gmra.mxu1 %v700_v25 }
 0x2c8   :  { %v703_v26 = vpop.f32.mrf.mxu0 }
 0x2c9   :  { %748 = vmatmul.f32.gmra.mxu1 %v703_v26 }
 0x314   :  { %v636_v27 = vpop.f32.mrf.mxu2  ;;  %v665_v28 = vpop.f32.mrf.mxu3 }
 0x315   :  { %v666_v30 = vadd.f32 %v665_v28, %v636_v27  ;;  %v853_v27 = vld [vmem:[%s1470_s7] sm:$0x1]  ;;  %s886_s7 = sshll.u32 %s1134_s6, 4  ;;  %s887_s7 = int_to_ptr.vmem [resolvable:$true] %s886_s7 }
 0x31c   :  { %v639_v31 = vpop.f32.mrf.mxu2  ;;  %v668_v33 = vpop.f32.mrf.mxu3 }
 0x31d   :  { %v669_v36 = vadd.f32 %v668_v33, %v639_v31 }
 0x324   :  { %v642_v11 = vpop.f32.mrf.mxu2  ;;  %v671_v20 = vpop.f32.mrf.mxu3 }
 0x325   :  { %v672_v50 = vadd.f32 %v671_v20, %v642_v11 }
 0x32c   :  { %v645_v38 = vpop.f32.mrf.mxu2  ;;  %v674_v55 = vpop.f32.mrf.mxu3 }
 0x32d   :  { %v675_v45 = vadd.f32 %v674_v55, %v645_v38  ;;  %v972_v38 = vld [vmem:[#allocation2 + $0x8] sm:$0xff] }
 0x32e   :  { %v740_v32 = vpop.f32.mrf.mxu1 }
 0x32f   :  { %v1433_v34 = vadd.f32 %v740_v32, %v666_v30 }
 0x331   :  { %v794_v35 = vmul.f32 %v1433_v34, %v1433_v34  ;;  %772 = vmatmul.f32.vlgmr.msra.gmra.mxu0 %v1433_v34 }
 0x333   :  { %814 = vmatmul.f32.vlgmr.msra.gmra.mxu1 %v794_v35 }
 0x336   :  { %v743_v37 = vpop.f32.mrf.mxu1 }
 0x337   :  { %v1438_v10 = vadd.f32 %v743_v37, %v669_v36 }
 0x339   :  { %v795_v46 = vmul.f32 %v1438_v10, %v1438_v10  ;;  %775 = vmatmul.f32.vlgmr.msrb.gmra.mxu2 %v1438_v10 }
 0x33b   :  { %817 = vmatmul.f32.vlgmr.msrb.gmra.mxu3 %v795_v46 }
 0x33e   :  { %v746_v56 = vpop.f32.mrf.mxu1 }
 0x33f   :  { %v1443_v29 = vadd.f32 %v746_v56, %v672_v50  ;;  %v971_v56 = vld [vmem:[#allocation2] sm:$0xff] }
 0x341   :  { %778 = vmatmul.f32.gmra.mxu2 %v1443_v29  ;;  %v796_v54 = vmul.f32 %v1443_v29, %v1443_v29 }
 0x343   :  { %820 = vmatmul.f32.gmra.mxu3 %v796_v54 }
 0x346   :  { %v749_v57 = vpop.f32.mrf.mxu1 }
 0x347   :  { %v755_v58 = vadd.f32 %v749_v57, %v675_v45  ;;  %v973_v45 = vld [vmem:[#allocation2 + $0x10] sm:$0xff] }
 0x349   :  { %781 = vmatmul.f32.gmra.mxu2 %v755_v58  ;;  %v797_v59 = vmul.f32 %v755_v58, %v755_v58 }
 0x34b   :  { %823 = vmatmul.f32.gmra.mxu3 %v797_v59  ;;  %v974_v59 = vld [vmem:[#allocation2 + $0x18] sm:$0xff] }
 0x3ae   :  { %v773_v1 = vpop.f32.mrf.mxu0 }
 0x3b0   :  { %v815_v3 = vpop.f32.mrf.mxu1 }
 0x3bc   :  { %v776_v60 = vpop.f32.mrf.mxu2 }
 0x3bd   :  { %v785_v2 = vadd.f32 %v776_v60, %v773_v1 }
 0x3be   :  { %v818_v61 = vpop.f32.mrf.mxu3 }
 0x3bf   :  { %v827_v12 = vadd.f32 %v818_v61, %v815_v3 }
 0x3c4   :  { %v779_v63 = vpop.f32.mrf.mxu2 }
 0x3c5   :  { %v786_v13 = vadd.f32 %v785_v2, %v779_v63 }
 0x3c6   :  { %v821_v0 = vpop.f32.mrf.mxu3 }
 0x3c7   :  { %v828_v15 = vadd.f32 %v827_v12, %v821_v0 }
 0x3cc   :  { %v782_v14 = vpop.f32.mrf.mxu2 }
 0x3cd   :  { %v787_v17 = vadd.f32 %v786_v13, %v782_v14 }
 0x3ce   :  { %v824_v18 = vpop.f32.mrf.mxu3 }
 0x3cf   :  { %v788_v19 = vrot.slane %v787_v17, 4  ;;  %v829_v21 = vadd.f32 %v828_v15, %v824_v18 }
 0x3d1   :  { %v789_v39 = vadd.f32 %v788_v19, %v787_v17  ;;  %v830_v40 = vrot.slane %v829_v21, 4 }
 0x3d3   :  { %v790_v41 = vrot.slane %v789_v39, 2  ;;  %v831_v42 = vadd.f32 %v830_v40, %v829_v21 }
 0x3d5   :  { %v791_v43 = vadd.f32 %v790_v41, %v789_v39  ;;  %v832_v44 = vrot.slane %v831_v42, 2 }
 0x3d7   :  { %v792_v47 = vrot.slane %v791_v43, 1  ;;  %v833_v48 = vadd.f32 %v832_v44, %v831_v42 }
 0x3d9   :  { %v793_v49 = vadd.f32 %v792_v47, %v791_v43  ;;  %v834_v51 = vrot.slane %v833_v48, 1 }
 0x3db   :  { %v836_v52 = vmul.f32 0.001953125, %v793_v49  ;;  %v835_v53 = vadd.f32 %v834_v51, %v833_v48 }
 0x3dd   :  { %v838_v62 = vmul.f32 %v836_v52, %v836_v52  ;;  %v837_v4 = vmul.f32 0.001953125, %v835_v53 }
 0x3df   :  { %v839_v5 = vsub.f32 %v837_v4, %v838_v62 }
 0x3e1   :  { %v841_v6 = vadd.f32 1e-05, %v839_v5 }
 0x3e3   :  { %969 = vrsqrt.f32 %v841_v6  ;;  %vm848_vm5 = vweird.f32 %v841_v6 }
 0x3e9   :  { %v970_v7 = vpop.eup %969 }
 0x3ea   :  { %v843_v8 = vmul.f32 %v970_v7, %v841_v6  ;;  %vm849_vm4 = vweird.f32 %v970_v7 }
 0x3eb   :  { %vm850_vm6 = vmor %vm848_vm5, %vm849_vm4 }
 0x3ec   :  { %v844_v9 = vmul.f32 %v970_v7, %v843_v8 }
 0x3ee   :  { %v845_v16 = vmul.f32 0.5, %v844_v9 }
 0x3f0   :  { %v846_v22 = vsub.f32 1.5, %v845_v16 }
 0x3f2   :  { %v847_v24 = vmul.f32 %v970_v7, %v846_v22 }
 0x3f4   :  { %v851_v25 = vsel %vm850_vm6, %v970_v7, %v847_v24 }
 0x3f5   :  { %v852_v26 = vmul.f32 %v851_v25, %v840_v23 }
 0x3f7   :  { %v854_v28 = vmul.f32 %v852_v26, %v836_v52  ;;  %v857_v30 = vperm.slane %v852_v26, 0 }
 0x3f9   :  { %v855_v31 = vsub.f32 %v853_v27, %v854_v28  ;;  %v859_v32 = vmul.f32 %v857_v30, %v1433_v34  ;;  %v860_v35 = vmul.f32 %v857_v30, %v1438_v10  ;;  %v861_v36 = vmul.f32 %v857_v30, %v1443_v29 }
 0x3fa   :  { %v862_v37 = vmul.f32 %v857_v30, %v755_v58 }
 0x3fb   :  { %v864_v33 = vperm.slane %v855_v31, 0 }
 0x3fd   :  { %v866_v11 = vadd.f32 %v864_v33, %v859_v32  ;;  %v867_v20 = vadd.f32 %v864_v33, %v860_v35  ;;  %v868_v46 = vadd.f32 %v864_v33, %v861_v36  ;;  %v869_v50 = vadd.f32 %v864_v33, %v862_v37 }
 0x3ff   :  { %v870_v54 = vadd.f32 %v971_v56, %v866_v11  ;;  %v871_v55 = vadd.f32 %v972_v38, %v867_v20  ;;  %v872_v57 = vadd.f32 %v973_v45, %v868_v46  ;;  %v873_v60 = vadd.f32 %v974_v59, %v869_v50 }
 0x401   :  { %v874_v61 = vmax.f32 %v870_v54, 0.0  ;;  %v875_v34 = vmax.f32 %v871_v55, 0.0  ;;  %v876_v63 = vmax.f32 %v872_v57, 0.0  ;;  %v877_v10 = vmax.f32 %v873_v60, 0.0 }
 0x403   :  { %878 = vst [vmem:[#allocation11] sm:$0xff] %v874_v61 }
 0x404   :  { %879 = vst [vmem:[#allocation11 + $0x8] sm:$0xff] %v875_v34 }
 0x405   :  { %880 = vst [vmem:[#allocation11 + $0x10] sm:$0xff] %v876_v63 }
 0x406   :  { %881 = vst [vmem:[#allocation11 + $0x18] sm:$0xff] %v877_v10 }
 0x407   :  { %894 = dma.vmem_to_hbm [thread:$0]  %s887_s7, 512, %s889_s20, [#allocation4], %s1128_s17, %s1128_s17, %s1129_s18  }
 0x408   :  { %1125 = dma.done.wait [#allocation4], 512  }
 0x409   :  { %1126 = vsyncadd [#allocation4], 4294966784 }
 0x40a   :  { %899 = vsyncpa [#allocation3], 1 }
 0x40b   :  { %900 = vsyncpa [#allocation6], 1 }
 0x40c   :  { %901 = vsyncpa [#allocation9], 1 }
 0x40d   :  { %902 = vsyncpa [#allocation4], 1 }

</bundles_post_ra>
